<compile_context>
chip_gen: v7x
topology: tpu7x:2x2x1
jax: 0.10.0
libtpu: 0.0.40
codegen_flags: <defaults>
</compile_context>

<pallas_src>
import jax
import jax.numpy as jnp
from jax.experimental import pallas as pl
from jax.experimental.pallas import tpu as pltpu


def _round_up(a, b):
    return ((a + b - 1) // b) * b


def _make_mtl_kernel(inv_n, rows, block_rows, lanes, steps_per_core, hard_targets):
    """Kernel factory closing over static geometry and the true (un-padded) 1/count."""

    def kernel(seg_ref, t0_ref, edge_ref, t1_ref, rec_ref, t2_ref, sigma_ref,
               out_ref, acc_ref):
        c = pl.program_id(0)          # core-split axis ("parallel")
        s = pl.program_id(1)          # streaming / reduction axis ("arbitrary")

        @pl.when(s == 0)
        def _init():
            acc_ref[...] = jnp.zeros_like(acc_ref)

        # Precision weights from SMEM sigma: 3 scalar exps per step — negligible.
        w0 = jnp.exp(-sigma_ref[0])
        w1 = jnp.exp(-sigma_ref[1])
        w2 = jnp.exp(-sigma_ref[2])

        def bce(p_ref, t_ref):
            # Upcast after load (inputs may be bf16 / int8); accumulate in f32.
            p = p_ref[...].astype(jnp.float32)
            t = t_ref[...].astype(jnp.float32)
            if hard_targets:
                # Binary-target fast path: one log per element instead of two.
                sel = jnp.where(t > 0.5, p, 1.0 - p)
                return -jnp.maximum(jnp.log(sel), -100.0)
            # PyTorch BCELoss clamps the log terms at -100 (clamp BEFORE multiply — no NaN,
            # and zero-padded lane-tail elements contribute exactly 0).
            logp = jnp.maximum(jnp.log(p), -100.0)
            log1mp = jnp.maximum(jnp.log(1.0 - p), -100.0)
            return -(t * logp + (1.0 - t) * log1mp)

        # Fused, sigma-weighted elementwise contribution (VPU/EUP only).
        contrib = (w0 * bce(seg_ref, t0_ref)
                   + w1 * bce(edge_ref, t1_ref)
                   + w2 * jnp.abs(rec_ref[...].astype(jnp.float32)
                                  - t2_ref[...].astype(jnp.float32)))

        # Mask rows beyond the true row count: edge / clamped-duplicate blocks hold garbage
        # (possibly NaN through the logs) — jnp.where discards it exactly.
        row_start = (c * steps_per_core + s) * block_rows
        row_ids = row_start + jax.lax.broadcasted_iota(jnp.int32, (block_rows, lanes), 0)
        acc_ref[...] += jnp.where(row_ids < rows, contrib, 0.0)

        @pl.when(s == pl.num_programs(1) - 1)
        def _finalize():
            # One XLU reduce per core per kernel invocation; per-core partial already
            # includes the exp(-sigma) weights and the 1/N of the three means.
            partial = jnp.sum(acc_ref[...]) * inv_n
            out_ref[...] = jnp.full(out_ref.shape, partial, dtype=jnp.float32)

    return kernel


def multi_task_loss(segmentation_mask, edge_mask, reconstruction_mask, sigma,
                    target_seg, target_edge, target_recon,
                    *, block_rows=512, lanes=512, num_cores=2, hard_targets=False):
    """JAX wrapper: lane-dense flattening + tiled, pipelined, multi-core streaming reduction.

    Default tiles: (512, 512) f32 -> 1 MiB/tile/stream; 6 streams x 2 pipeline buffers + one
    fused f32 accumulator ~= 13 MiB per core — inside scoped VMEM on v5e/v6e/v7x (set
    explicitly via vmem_limit_bytes below).  bf16 / int8 inputs halve / quarter the stream.
    """
    assert lanes % 128 == 0, "lanes must be a multiple of 128 (lane-dense layout)"
    assert block_rows % 8 == 0, "block_rows must be a multiple of 8 (sublane tiling)"

    n_elem = segmentation_mask.size
    streams = (segmentation_mask, target_seg, edge_mask, target_edge,
               reconstruction_mask, target_recon)
    for t in streams[1:]:
        assert t.size == n_elem, "all masks/targets must have the same element count"

    sigma_f32 = jnp.asarray(sigma, jnp.float32).reshape(-1)
    assert sigma_f32.size == 3, "sigma must have 3 entries (seg, edge, recon)"

    # Pad only to a multiple of `lanes` (tiny; skipped when already aligned).  The zero fill
    # contributes exactly 0 to BCE (clamped logs) and L1; the mean divides by the TRUE count.
    padded = _round_up(n_elem, lanes)
    rows = padded // lanes

    # Shrink the row-tile for tiny inputs so a single block covers everything.
    block_rows = min(block_rows, max(8, _round_up(rows, 8)))
    total_blocks = pl.cdiv(rows, block_rows)
    num_cores = max(1, int(num_cores))
    steps_per_core = pl.cdiv(total_blocks, num_cores)

    def slab(x):
        # Keep the stored dtype (no wrapper f32 upcast) — upcast happens in-kernel.
        flat = x.reshape(-1)
        if padded != n_elem:
            flat = jnp.pad(flat, (0, padded - n_elem))
        return flat.reshape(rows, lanes)

    kernel = _make_mtl_kernel(1.0 / float(n_elem), rows, block_rows, lanes,
                              steps_per_core, hard_targets)

    def in_idx(c, s):
        # Clamp to the last valid block; the duplicated data is fully masked in-kernel.
        return (jnp.minimum(c * steps_per_core + s, total_blocks - 1), 0)

    tile_spec = pl.BlockSpec((block_rows, lanes), in_idx)
    smem_spec = pl.BlockSpec(memory_space=pltpu.MemorySpace.SMEM)
    out_spec = pl.BlockSpec((1, 8, 128), lambda c, s: (c, 0, 0))   # per-core partial sum

    grid_spec = pltpu.PrefetchScalarGridSpec(
        num_scalar_prefetch=0,
        grid=(num_cores, steps_per_core),
        in_specs=[tile_spec, tile_spec,   # seg, t0
                  tile_spec, tile_spec,   # edge, t1
                  tile_spec, tile_spec,   # recon, t2
                  smem_spec],             # sigma (3,)
        out_specs=out_spec,
        scratch_shapes=[pltpu.VMEM((block_rows, lanes), jnp.float32)],  # fused accumulator
    )

    # Explicit VMEM budget: 6 double-buffered streams + fused accumulator + slack.
    tile_elems = block_rows * lanes
    stream_bytes = sum(2 * tile_elems * jnp.dtype(t.dtype).itemsize for t in streams)
    vmem_need = stream_bytes + 4 * tile_elems + num_cores * 8 * 128 * 4 + (2 << 20)
    vmem_limit = int(min(max(int(vmem_need * 1.25), 16 << 20), 64 << 20))

    n_logs = (2 if hard_targets else 4) * n_elem
    cost = pl.CostEstimate(
        flops=12 * n_elem,
        transcendentals=n_logs + 3,
        bytes_accessed=sum(int(t.size) * jnp.dtype(t.dtype).itemsize for t in streams)
                       + 3 * 4 + num_cores * 8 * 128 * 4,
    )

    partials_out = pl.pallas_call(
        kernel,
        out_shape=jax.ShapeDtypeStruct((num_cores, 8, 128), jnp.float32),
        grid_spec=grid_spec,
        compiler_params=pltpu.CompilerParams(
            dimension_semantics=("parallel", "arbitrary"),
            vmem_limit_bytes=vmem_limit),
        cost_estimate=cost,
    )(slab(segmentation_mask), slab(target_seg),
      slab(edge_mask), slab(target_edge),
      slab(reconstruction_mask), slab(target_recon),
      sigma_f32)

    # Sigma combine in the wrapper (scalar glue): sum per-core partials + sum(sigma^2).
    partials = partials_out[:, 0, 0]
    loss = jnp.sum(partials) + jnp.sum(sigma_f32 * sigma_f32)

    return (loss, segmentation_mask, edge_mask, reconstruction_mask)


def _synthetic_model(x, sigma):
    """Deterministic stand-in for `self.model.forward(targets[-1])` (plain-JAX glue)."""
    seg = jax.nn.sigmoid(x)
    edge = jax.nn.sigmoid(0.5 * x - 0.1)
    recon = jnp.tanh(x)
    return seg, edge, recon, sigma


def _reference_loss(seg, edge, recon, sigma, t0, t1, t2):
    """Pure-JAX reference for correctness check."""
    def bce(p, t):
        logp = jnp.maximum(jnp.log(p), -100.0)
        log1mp = jnp.maximum(jnp.log(1.0 - p), -100.0)
        return -jnp.mean(t * logp + (1.0 - t) * log1mp)
    l1 = bce(seg, t0)
    l2 = bce(edge, t1)
    l3 = jnp.mean(jnp.abs(recon - t2))
    s0, s1, s2 = sigma[0], sigma[1], sigma[2]
    return (jnp.exp(-s0) * l1 + s0 * s0
            + jnp.exp(-s1) * l2 + s1 * s1
            + jnp.exp(-s2) * l3 + s2 * s2)


if __name__ == "__main__":
    key = jax.random.PRNGKey(0)
    k_x, k_t0, k_t1, k_t2, k_x2, k_u0, k_u1, k_r2 = jax.random.split(key, 8)

    # ---------------- primary NCHW case ----------------
    N, C, H, W = 2, 4, 16, 16
    x_input = jax.random.normal(k_x, (N, C, H, W), dtype=jnp.float32)
    target_seg = (jax.random.uniform(k_t0, (N, C, H, W)) > 0.5).astype(jnp.float32)
    target_edge = (jax.random.uniform(k_t1, (N, C, H, W)) > 0.5).astype(jnp.float32)
    target_recon = jax.random.normal(k_t2, (N, C, H, W), dtype=jnp.float32)
    sigma = jnp.array([0.5, -0.25, 0.1], dtype=jnp.float32)

    seg, edge, recon, sigma = _synthetic_model(x_input, sigma)
    ref = _reference_loss(seg, edge, recon, sigma, target_seg, target_edge, target_recon)

    # 1) Production-style tiles, default 2-core split (masked duplicate block on small input).
    loss, seg_out, edge_out, recon_out = multi_task_loss(
        seg, edge, recon, sigma, target_seg, target_edge, target_recon)
    loss = jax.block_until_ready(loss)
    assert jnp.allclose(loss, ref, rtol=1e-5, atol=1e-5), (loss, ref)
    assert seg_out.shape == (N, C, H, W)
    assert edge_out.shape == (N, C, H, W)
    assert recon_out.shape == (N, C, H, W)

    # 2) Tiny tiles, single core: exercises the multi-step accumulating grid path.
    loss_tiled, *_ = multi_task_loss(
        seg, edge, recon, sigma, target_seg, target_edge, target_recon,
        block_rows=8, lanes=128, num_cores=1)
    loss_tiled = jax.block_until_ready(loss_tiled)
    assert jnp.allclose(loss_tiled, ref, rtol=1e-5, atol=1e-5), (loss_tiled, ref)

    # 3) Tiny tiles, 2-core split with one real block per core.
    loss_2c, *_ = multi_task_loss(
        seg, edge, recon, sigma, target_seg, target_edge, target_recon,
        block_rows=8, lanes=128, num_cores=2)
    loss_2c = jax.block_until_ready(loss_2c)
    assert jnp.allclose(loss_2c, ref, rtol=1e-5, atol=1e-5), (loss_2c, ref)

    # 4) bf16 prediction / int8 hard-target streaming + single-log BCE fast path.
    N2, C2, H2, W2 = 2, 4, 32, 64
    x2 = jax.random.normal(k_x2, (N2, C2, H2, W2), dtype=jnp.float32)
    tseg2_i8 = (jax.random.uniform(k_u0, (N2, C2, H2, W2)) > 0.5).astype(jnp.int8)
    tedge2_i8 = (jax.random.uniform(k_u1, (N2, C2, H2, W2)) > 0.5).astype(jnp.int8)
    trec2_bf = jax.random.normal(k_r2, (N2, C2, H2, W2), dtype=jnp.float32).astype(jnp.bfloat16)
    seg2, edge2, recon2, _ = _synthetic_model(x2, sigma)
    seg2_bf, edge2_bf, recon2_bf = (seg2.astype(jnp.bfloat16), edge2.astype(jnp.bfloat16),
                                    recon2.astype(jnp.bfloat16))
    ref2 = _reference_loss(seg2_bf.astype(jnp.float32), edge2_bf.astype(jnp.float32),
                           recon2_bf.astype(jnp.float32), sigma,
                           tseg2_i8.astype(jnp.float32), tedge2_i8.astype(jnp.float32),
                           trec2_bf.astype(jnp.float32))
    loss_bf16, *_ = multi_task_loss(
        seg2_bf, edge2_bf, recon2_bf, sigma, tseg2_i8, tedge2_i8, trec2_bf,
        hard_targets=True)
    loss_bf16 = jax.block_until_ready(loss_bf16)
    assert jnp.allclose(loss_bf16, ref2, rtol=1e-5, atol=1e-5), (loss_bf16, ref2)

    # 5) Size not a multiple of `lanes`: exercises lane-tail zero pad + masked partial block.
    Nu, Cu, Hu, Wu = 2, 3, 10, 10
    xu = jax.random.normal(k_x2, (Nu, Cu, Hu, Wu), dtype=jnp.float32)
    tsu = (jax.random.uniform(k_u0, (Nu, Cu, Hu, Wu)) > 0.5).astype(jnp.float32)
    teu = (jax.random.uniform(k_u1, (Nu, Cu, Hu, Wu)) > 0.5).astype(jnp.float32)
    tru = jax.random.normal(k_r2, (Nu, Cu, Hu, Wu), dtype=jnp.float32)
    segu, edgeu, reconu, _ = _synthetic_model(xu, sigma)
    refu = _reference_loss(segu, edgeu, reconu, sigma, tsu, teu, tru)
    loss_u, *_ = multi_task_loss(segu, edgeu, reconu, sigma, tsu, teu, tru, lanes=128)
    loss_u = jax.block_until_ready(loss_u)
    assert jnp.allclose(loss_u, refu, rtol=1e-5, atol=1e-5), (loss_u, refu)

    print("KERNEL_OK")
</pallas_src>

<mosaic_0001>
module attributes {stable_mosaic.version = 11 : i64} {
  func.func @kernel(%arg0: i32, %arg1: i32, %arg2: memref<8x512xf32, #tpu.memory_space<vmem>>, %arg3: memref<8x512xf32, #tpu.memory_space<vmem>>, %arg4: memref<8x512xf32, #tpu.memory_space<vmem>>, %arg5: memref<8x512xf32, #tpu.memory_space<vmem>>, %arg6: memref<8x512xf32, #tpu.memory_space<vmem>>, %arg7: memref<8x512xf32, #tpu.memory_space<vmem>>, %arg8: memref<3xf32, #tpu.memory_space<smem>>, %arg9: memref<1x8x128xf32, #tpu.memory_space<vmem>>, %arg10: memref<8x512xf32, #tpu.memory_space<vmem>>) attributes {dimension_semantics = [#tpu.dimension_semantics<parallel>, #tpu.dimension_semantics<arbitrary>], iteration_bounds = array<i64: 2, 1>, scalar_prefetch = 0 : i64, scratch_operands = 1 : i64, tpu.core_type = #tpu.core_type<tc>, window_params = [{transform_indices = @transform_0, window_bounds = array<i64: 8, 512>}, {transform_indices = @transform_1, window_bounds = array<i64: 8, 512>}, {transform_indices = @transform_2, window_bounds = array<i64: 8, 512>}, {transform_indices = @transform_3, window_bounds = array<i64: 8, 512>}, {transform_indices = @transform_4, window_bounds = array<i64: 8, 512>}, {transform_indices = @transform_5, window_bounds = array<i64: 8, 512>}, {transform_indices = @transform_6, window_bounds = array<i64: 3>}, {transform_indices = @transform_7, window_bounds = array<i64: 1, 8, 128>}]} {
    %c0_i32 = arith.constant 0 : i32
    %0 = arith.cmpi eq, %arg1, %c0_i32 : i32
    %1 = arith.extui %0 : i1 to i32
    %c0_i32_0 = arith.constant 0 : i32
    %2 = arith.cmpi ne, %1, %c0_i32_0 : i32
    scf.if %2 {
      %cst_32 = arith.constant 0.000000e+00 : f32
      %74 = vector.broadcast %cst_32 : f32 to vector<8x512xf32>
      %c0_33 = arith.constant 0 : index
      %c0_34 = arith.constant 0 : index
      %75 = vector.load %arg10[%c0_33, %c0_34] : memref<8x512xf32, #tpu.memory_space<vmem>>, vector<8x512xf32>
      tpu.vector_store %arg10[%c0_33, %c0_34], %74 {strides = array<i32>} : memref<8x512xf32, #tpu.memory_space<vmem>>, vector<8x512xf32>,
    } else {
    }
    %c0 = arith.constant 0 : index
    %3 = memref.load %arg8[%c0] : memref<3xf32, #tpu.memory_space<smem>>
    %cst = arith.constant 0.000000e+00 : f32
    %4 = arith.subf %cst, %3 : f32
    %5 = math.exp %4 : f32
    %c1 = arith.constant 1 : index
    %6 = memref.load %arg8[%c1] : memref<3xf32, #tpu.memory_space<smem>>
    %cst_1 = arith.constant 0.000000e+00 : f32
    %7 = arith.subf %cst_1, %6 : f32
    %8 = math.exp %7 : f32
    %c2 = arith.constant 2 : index
    %9 = memref.load %arg8[%c2] : memref<3xf32, #tpu.memory_space<smem>>
    %cst_2 = arith.constant 0.000000e+00 : f32
    %10 = arith.subf %cst_2, %9 : f32
    %11 = math.exp %10 : f32
    %c0_3 = arith.constant 0 : index
    %c0_4 = arith.constant 0 : index
    %12 = vector.load %arg2[%c0_3, %c0_4] : memref<8x512xf32, #tpu.memory_space<vmem>>, vector<8x512xf32>
    %c0_5 = arith.constant 0 : index
    %c0_6 = arith.constant 0 : index
    %13 = vector.load %arg3[%c0_5, %c0_6] : memref<8x512xf32, #tpu.memory_space<vmem>>, vector<8x512xf32>
    %14 = math.log %12 : vector<8x512xf32>
    %cst_7 = arith.constant -1.000000e+02 : f32
    %15 = vector.broadcast %cst_7 : f32 to vector<8x512xf32>
    %16 = arith.maximumf %14, %15 : vector<8x512xf32>
    %cst_8 = arith.constant 1.000000e+00 : f32
    %17 = vector.broadcast %cst_8 : f32 to vector<8x512xf32>
    %18 = arith.subf %17, %12 : vector<8x512xf32>
    %19 = math.log %18 : vector<8x512xf32>
    %cst_9 = arith.constant -1.000000e+02 : f32
    %20 = vector.broadcast %cst_9 : f32 to vector<8x512xf32>
    %21 = arith.maximumf %19, %20 : vector<8x512xf32>
    %22 = arith.mulf %13, %16 : vector<8x512xf32>
    %cst_10 = arith.constant 1.000000e+00 : f32
    %23 = vector.broadcast %cst_10 : f32 to vector<8x512xf32>
    %24 = arith.subf %23, %13 : vector<8x512xf32>
    %25 = arith.mulf %24, %21 : vector<8x512xf32>
    %26 = arith.addf %22, %25 : vector<8x512xf32>
    %cst_11 = arith.constant 0.000000e+00 : f32
    %27 = vector.broadcast %cst_11 : f32 to vector<8x512xf32>
    %28 = arith.subf %27, %26 : vector<8x512xf32>
    %29 = vector.broadcast %5 : f32 to vector<8x512xf32>
    %30 = arith.mulf %29, %28 : vector<8x512xf32>
    %c0_12 = arith.constant 0 : index
    %c0_13 = arith.constant 0 : index
    %31 = vector.load %arg4[%c0_12, %c0_13] : memref<8x512xf32, #tpu.memory_space<vmem>>, vector<8x512xf32>
    %c0_14 = arith.constant 0 : index
    %c0_15 = arith.constant 0 : index
    %32 = vector.load %arg5[%c0_14, %c0_15] : memref<8x512xf32, #tpu.memory_space<vmem>>, vector<8x512xf32>
    %33 = math.log %31 : vector<8x512xf32>
    %cst_16 = arith.constant -1.000000e+02 : f32
    %34 = vector.broadcast %cst_16 : f32 to vector<8x512xf32>
    %35 = arith.maximumf %33, %34 : vector<8x512xf32>
    %cst_17 = arith.constant 1.000000e+00 : f32
    %36 = vector.broadcast %cst_17 : f32 to vector<8x512xf32>
    %37 = arith.subf %36, %31 : vector<8x512xf32>
    %38 = math.log %37 : vector<8x512xf32>
    %cst_18 = arith.constant -1.000000e+02 : f32
    %39 = vector.broadcast %cst_18 : f32 to vector<8x512xf32>
    %40 = arith.maximumf %38, %39 : vector<8x512xf32>
    %41 = arith.mulf %32, %35 : vector<8x512xf32>
    %cst_19 = arith.constant 1.000000e+00 : f32
    %42 = vector.broadcast %cst_19 : f32 to vector<8x512xf32>
    %43 = arith.subf %42, %32 : vector<8x512xf32>
    %44 = arith.mulf %43, %40 : vector<8x512xf32>
    %45 = arith.addf %41, %44 : vector<8x512xf32>
    %cst_20 = arith.constant 0.000000e+00 : f32
    %46 = vector.broadcast %cst_20 : f32 to vector<8x512xf32>
    %47 = arith.subf %46, %45 : vector<8x512xf32>
    %48 = vector.broadcast %8 : f32 to vector<8x512xf32>
    %49 = arith.mulf %48, %47 : vector<8x512xf32>
    %50 = arith.addf %30, %49 : vector<8x512xf32>
    %c0_21 = arith.constant 0 : index
    %c0_22 = arith.constant 0 : index
    %51 = vector.load %arg6[%c0_21, %c0_22] : memref<8x512xf32, #tpu.memory_space<vmem>>, vector<8x512xf32>
    %c0_23 = arith.constant 0 : index
    %c0_24 = arith.constant 0 : index
    %52 = vector.load %arg7[%c0_23, %c0_24] : memref<8x512xf32, #tpu.memory_space<vmem>>, vector<8x512xf32>
    %53 = arith.subf %51, %52 : vector<8x512xf32>
    %54 = math.absf %53 : vector<8x512xf32>
    %55 = vector.broadcast %11 : f32 to vector<8x512xf32>
    %56 = arith.mulf %55, %54 : vector<8x512xf32>
    %57 = arith.addf %50, %56 : vector<8x512xf32>
    %c1_i32 = arith.constant 1 : i32
    %58 = arith.muli %arg0, %c1_i32 : i32
    %59 = arith.addi %58, %arg1 : i32
    %c8_i32 = arith.constant 8 : i32
    %60 = arith.muli %59, %c8_i32 : i32
    %61 = tpu.iota {dimensions = array<i32: 0>} : vector<8x512xi32>
    %62 = vector.broadcast %60 : i32 to vector<8x512xi32>
    %63 = arith.addi %62, %61 : vector<8x512xi32>
    %c0_25 = arith.constant 0 : index
    %c0_26 = arith.constant 0 : index
    %64 = vector.load %arg10[%c0_25, %c0_26] : memref<8x512xf32, #tpu.memory_space<vmem>>, vector<8x512xf32>
    %c4_i32 = arith.constant 4 : i32
    %65 = vector.broadcast %c4_i32 : i32 to vector<8x512xi32>
    %66 = arith.cmpi slt, %63, %65 : vector<8x512xi32>
    %cst_27 = arith.constant 0.000000e+00 : f32
    %67 = vector.broadcast %cst_27 : f32 to vector<8x512xf32>
    %68 = arith.select %66, %57, %67 : vector<8x512xi1>, vector<8x512xf32>
    %69 = arith.addf %64, %68 : vector<8x512xf32>
    %c0_28 = arith.constant 0 : index
    %c0_29 = arith.constant 0 : index
    %70 = vector.load %arg10[%c0_28, %c0_29] : memref<8x512xf32, #tpu.memory_space<vmem>>, vector<8x512xf32>
    tpu.vector_store %arg10[%c0_28, %c0_29], %69 {strides = array<i32>} : memref<8x512xf32, #tpu.memory_space<vmem>>, vector<8x512xf32>,
    %c0_i32_30 = arith.constant 0 : i32
    %71 = arith.cmpi eq, %arg1, %c0_i32_30 : i32
    %72 = arith.extui %71 : i1 to i32
    %c0_i32_31 = arith.constant 0 : i32
    %73 = arith.cmpi ne, %72, %c0_i32_31 : i32
    scf.if %73 {
      %c0_32 = arith.constant 0 : index
      %c0_33 = arith.constant 0 : index
      %74 = vector.load %arg10[%c0_32, %c0_33] : memref<8x512xf32, #tpu.memory_space<vmem>>, vector<8x512xf32>
      %75 = vector.shape_cast %74 : vector<8x512xf32> to vector<1x8x512xf32>
      %cst_34 = arith.constant dense<0.000000e+00> : vector<1xf32>
      %76 = vector.multi_reduction <add>, %75, %cst_34 [1, 2] : vector<1x8x512xf32> to vector<1xf32>
      %77 = vector.shape_cast %76 : vector<1xf32> to vector<1x1x1xf32>
      %78 = vector.extract %77[0, 0, 0] : f32 from vector<1x1x1xf32>
      %cst_35 = arith.constant 4.8828125E-4 : f32
      %79 = arith.mulf %78, %cst_35 : f32
      %80 = vector.broadcast %79 : f32 to vector<1x8x128xf32>
      %c0_36 = arith.constant 0 : index
      %c0_37 = arith.constant 0 : index
      %c0_38 = arith.constant 0 : index
      %81 = vector.load %arg9[%c0_36, %c0_37, %c0_38] : memref<1x8x128xf32, #tpu.memory_space<vmem>>, vector<1x8x128xf32>
      tpu.vector_store %arg9[%c0_36, %c0_37, %c0_38], %80 {strides = array<i32>} : memref<1x8x128xf32, #tpu.memory_space<vmem>>, vector<1x8x128xf32>,
    } else {
    }
    return
  }
  func.func @transform_0(%arg0: i32, %arg1: i32) -> (i32, i32) {
    %c1_i32 = arith.constant 1 : i32
    %0 = arith.muli %arg0, %c1_i32 : i32
    %1 = arith.addi %0, %arg1 : i32
    %c0_i32 = arith.constant 0 : i32
    %2 = arith.minsi %1, %c0_i32 : i32
    %c0_i32_0 = arith.constant 0 : i32
    %c0_i32_1 = arith.constant 0 : i32
    return %2, %c0_i32_0 : i32, i32
  }
  func.func @transform_1(%arg0: i32, %arg1: i32) -> (i32, i32) {
    %c1_i32 = arith.constant 1 : i32
    %0 = arith.muli %arg0, %c1_i32 : i32
    %1 = arith.addi %0, %arg1 : i32
    %c0_i32 = arith.constant 0 : i32
    %2 = arith.minsi %1, %c0_i32 : i32
    %c0_i32_0 = arith.constant 0 : i32
    %c0_i32_1 = arith.constant 0 : i32
    return %2, %c0_i32_0 : i32, i32
  }
  func.func @transform_2(%arg0: i32, %arg1: i32) -> (i32, i32) {
    %c1_i32 = arith.constant 1 : i32
    %0 = arith.muli %arg0, %c1_i32 : i32
    %1 = arith.addi %0, %arg1 : i32
    %c0_i32 = arith.constant 0 : i32
    %2 = arith.minsi %1, %c0_i32 : i32
    %c0_i32_0 = arith.constant 0 : i32
    %c0_i32_1 = arith.constant 0 : i32
    return %2, %c0_i32_0 : i32, i32
  }
  func.func @transform_3(%arg0: i32, %arg1: i32) -> (i32, i32) {
    %c1_i32 = arith.constant 1 : i32
    %0 = arith.muli %arg0, %c1_i32 : i32
    %1 = arith.addi %0, %arg1 : i32
    %c0_i32 = arith.constant 0 : i32
    %2 = arith.minsi %1, %c0_i32 : i32
    %c0_i32_0 = arith.constant 0 : i32
    %c0_i32_1 = arith.constant 0 : i32
    return %2, %c0_i32_0 : i32, i32
  }
  func.func @transform_4(%arg0: i32, %arg1: i32) -> (i32, i32) {
    %c1_i32 = arith.constant 1 : i32
    %0 = arith.muli %arg0, %c1_i32 : i32
    %1 = arith.addi %0, %arg1 : i32
    %c0_i32 = arith.constant 0 : i32
    %2 = arith.minsi %1, %c0_i32 : i32
    %c0_i32_0 = arith.constant 0 : i32
    %c0_i32_1 = arith.constant 0 : i32
    return %2, %c0_i32_0 : i32, i32
  }
  func.func @transform_5(%arg0: i32, %arg1: i32) -> (i32, i32) {
    %c1_i32 = arith.constant 1 : i32
    %0 = arith.muli %arg0, %c1_i32 : i32
    %1 = arith.addi %0, %arg1 : i32
    %c0_i32 = arith.constant 0 : i32
    %2 = arith.minsi %1, %c0_i32 : i32
    %c0_i32_0 = arith.constant 0 : i32
    %c0_i32_1 = arith.constant 0 : i32
    return %2, %c0_i32_0 : i32, i32
  }
  func.func @transform_6(%arg0: i32, %arg1: i32) -> i32 {
    %c0_i32 = arith.constant 0 : i32
    %c0_i32_0 = arith.constant 0 : i32
    return %c0_i32 : i32
  }
  func.func @transform_7(%arg0: i32, %arg1: i32) -> (i32, i32, i32) {
    %c0_i32 = arith.constant 0 : i32
    %c0_i32_0 = arith.constant 0 : i32
    %c0_i32_1 = arith.constant 0 : i32
    return %arg0, %c0_i32, %c0_i32_0 : i32, i32, i32
  }
}

</mosaic_0001>

<bundles_post_ra>
// kernel: tpu_custom_call.1
= control target key start
LH: loop header
LB: loop body
LE: loop exit
PB: predicated region body
PF: predicated region fallthrough
CT: control target
= control target key end

     0   :  { %s1984_s0 = inlined_call_operand.hbm [shape: f32[4,512], index: 0, kind: input, shape index: {}]   ;;  %s1985_s1 = inlined_call_operand.hbm [shape: f32[4,512], index: 1, kind: input, shape index: {}]   ;;  %s1986_s2 = inlined_call_operand.hbm [shape: f32[4,512], index: 2, kind: input, shape index: {}]   ;;  %s1987_s3 = inlined_call_operand.hbm [shape: f32[4,512], index: 3, kind: input, shape index: {}]   ;;  %s1988_s4 = inlined_call_operand.hbm [shape: f32[4,512], index: 4, kind: input, shape index: {}]   ;;  %s1989_s5 = inlined_call_operand.vmem [shape: f32[4,512], index: 5, kind: input, shape index: {}]   ;;  %s1990_s6 = inlined_call_operand.vmem [shape: f32[3], index: 6, kind: input, shape index: {}]   ;;  %s1991_s7 = inlined_call_operand.hbm [shape: f32[2,8,128], index: 7, kind: output, shape index: {}]  }
   0x1   :  { %1998 = sst [smem:[#allocation25_spill]] %s1984_s0 }
   0x2   :  { %1999 = sst [smem:[#allocation26_spill]] %s1990_s6 }
   0x3   :  { %12 = vsyncpa [#allocation4], 0 }
   0x4   :  { %14 = vsyncpa [#allocation4 + $0x1], 0 }
   0x5   :  { %15 = vsyncpa [#allocation8], 0 }
   0x6   :  { %17 = vsyncpa [#allocation8 + $0x1], 0 }
   0x7   :  { %18 = vsyncpa [#allocation11], 0 }
   0x8   :  { %20 = vsyncpa [#allocation11 + $0x1], 0 }
   0x9   :  { %21 = vsyncpa [#allocation6], 0 }
   0xa   :  { %22 = vsyncpa [#allocation5], 0 }
   0xb   :  { %24 = vsyncpa [#allocation5 + $0x1], 0  ;;  %s1658_s24 = smov 0   ;;  %s1660_s25 = smov 0  }
   0xc   :  { %s1662_s26 = smov 0   ;;  %s1664_s27 = smov 0  }
   0xd   :  { %s1666_s28 = smov 0   ;;  %s1668_s29 = smov 0  }
   0xe   :  { %s1670_s30 = smov 0   ;;  %s1672_s8 = smov 0  }
   0xf LB: > { %2000 = sst [smem:[#allocation20_spill]] %s1579_s26  ;;  %s1697_s9 = sadd.s32 4294967295, %s1599_s8   ;;  %s1599_s8 = sphi %s1672_s8, %s30_s8   ;;  %s1595_s30 = sphi %s1670_s30, %s2020_s30   ;;  %s1591_s29 = sphi %s1668_s29, %s2019_s29   ;;  %s1587_s28 = sphi %s1666_s28, %s1974_s28   ;;  %s1583_s27 = sphi %s1664_s27, %s2023_s27   ;;  %s1579_s26 = sphi %s1662_s26, %s2018_s26   ;;  %s1575_s25 = sphi %s1660_s25, %s2022_s25   ;;  %s1571_s24 = sphi %s1658_s24, %s2021_s24  }
  0x10   : > { %2001 = sst [smem:[#allocation21_spill]] %s1595_s30  ;;  %s1085_s10 = sadd.s32 4294967294, %s1599_s8  }
  0x11   : > { %s42_s11 = sadd.s32 1, %s1595_s30  ;;  %p1568_p1 = scmp.ne.s32.totalorder %s1587_s28, 0 }
  0x12   : > { %p44_p0 = scmp.ge.s32.totalorder %s42_s11, 2  ;;  %p63_p2 = scmp.eq.s32.totalorder %s1599_s8, 0 }
  0x13   : > { %p68_p3 = scmp.ne.s32.totalorder %s1587_s28, %s1583_s27  ;;  %p69_p5 = scmp.eq.s32.totalorder %s1697_s9, 0 }
  0x14   : > { %s2025_s11 = smov (%p44_p0, %s42_s11), 0  ;;  %p1706_p4 = por %p1568_p1, %p63_p2 }
  0x15   : > { %2002 = sst [smem:[#allocation22_spill]] %s2025_s11  ;;  %p1713_p6 = por %p69_p5, %p68_p3 }
  0x16   : > { %s259_s14 = ssub.s32 %s1595_s30, %s2025_s11  ;;  %s262_s15 = sadd.s32 1, %s1579_s26 }
  0x17   : > { %s2004_s13 = scalar_select %p1713_p6, 1, 0 }
  0x18   : > { %p260_p7 = scmp.eq.s32.totalorder %s259_s14, 0  ;;  %p272_p8 = scmp.ne.s32.totalorder %s1579_s26, %s1575_s25 }
  0x19   : > { %p273_p9 = scmp.eq.s32.totalorder %s1697_s9, 1  ;;  %p278_p10 = scmp.ne.s32.totalorder %s1575_s25, %s1571_s24 }
  0x1a   : > { %s1721_s16 = scalar_select %p260_p7, %s1579_s26, %s262_s15  }
  0x1b   : > { %p279_p11 = scmp.eq.s32.totalorder %s1085_s10, 1  ;;  %p1728_p12 = por %p273_p9, %p272_p8 }
  0x1c   : > { %2005 = sst [smem:[#allocation23_spill]] %s1721_s16  ;;  %p1086_p13 = scmp.ge.s32.totalorder %s1599_s8, 1 }
  0x1d   : > { %s2006_s17 = scalar_select %p1728_p12, 1, 0 }
  0x1e   : > { %p1733_p0 = por %p279_p11, %p278_p10  ;;  %p286_p1 = scmp.lt.s32.totalorder %s1599_s8, 3 }
  0x1f   : > { %s2010_s6 = sld [smem:[#allocation26_spill]] }
  0x20   : > { %s2007_s18 = scalar_select %p1733_p0, 1, 0 }
  0x21   : > { %p1738_p2 = pnand %p1086_p13, %p286_p1 }
  0x22   : > { %2008 = sst [smem:[#allocation24_spill]] %s2007_s18 }
  0x23   : > { %p1187_p3 = pneg %p1738_p2 }
  0x25   : > { %s299_s22 = sshll.u32 %s2010_s6, 4  ;;  %p1188_p7 = pnand %p1187_p3, %p69_p5  ;;  %s300_s22 = int_to_ptr.vmem [resolvable:$true] %s299_s22 }
  0x26   : > { %s1319_s23 = scalar_lea.vmem %s300_s22, 16  ;;  %p1327_p0 = scmp.lt.s32.totalorder %s300_s22, %s300_s22 }
  0x27   : > { %p1320_p8 = scmp.ne.s32.totalorder %s300_s22, %s1319_s23  ;;  %p1321_p9 = pneg %p1188_p7 }
  0x28   : > { %p1328_p13 = scmp.lt.s32.totalorder %s1319_s23, %s1319_s23 }
  0x29   : > { %p1322_p10 = pnand %p1321_p9, %p1320_p8 }
  0x2a   : > { %p1329_p1 = por %p1328_p13, %p1327_p0 }
  0x2b   : > { %p1323_p11 = pneg %p1322_p10 }
  0x2d   : > { %p1330_p12 = pnand %p1329_p1, %p1323_p11 }
  0x2f   : > { %1333 = shalt.err (!%p1330_p12)
}
  0x30   : > { %s1601_s27 = smov [#allocation13]   ;;  %p1088_p6 = scmp.ge.s32.totalorder %s1599_s8, 2 }
  0x31   : > { %1190 = dma.vmem_to_smem (!%p1188_p7), %s300_s22, 16, %s1601_s27, [#allocation6]  }
  0x32   : > { %306 = sbr.rel (%p1088_p6) target bundleno = 198 (0xc6), region = 20 }
  0x39   : > { %309 = sbr.rel (!%p1706_p4) target bundleno = 90 (0x5a), region = 24 }
  0x40   : > { %324 = vsyncadd [#allocation4], 256  ;;  %s1602_s10 = smov [#allocation3]   ;;  %s2011_s0 = sld [smem:[#allocation25_spill]] }
  0x41   : > { %s330_s14 = sshll.u32 %s1602_s10, 4  ;;  %s331_s14 = int_to_ptr.vmem [resolvable:$true] %s330_s14 }
  0x46   : > { %s1334_s21 = scalar_lea.hbm %s2011_s0, 256 }
  0x47   : > { %p1335_p12 = scmp.ne.s32.totalorder %s2011_s0, %s1334_s21  ;;  %p1340_p0 = scmp.lt.u32.totalorder %s1334_s21, %s1334_s21 }
  0x48   : > { %p1342_p3 = scmp.lt.u32.totalorder %s1334_s21, %s2011_s0 }
  0x4a   : > { %p1343_p7 = por %p1342_p3, %p1340_p0 }
  0x4c   : > { %p1344_p8 = pnand %p1343_p7, %p1335_p12 }
  0x4e   : > { %1347 = shalt.err (!%p1344_p8)
}
  0x4f   : > { %s1348_s11 = scalar_lea.vmem %s331_s14, 256  ;;  %s1354_s10 = scalar_lea.vmem %s331_s14, 1024 }
  0x50   : > { %p1349_p9 = scmp.ne.s32.totalorder %s331_s14, %s1348_s11  ;;  %p1355_p10 = scmp.lt.s32.totalorder %s331_s14, %s331_s14 }
  0x51   : > { %p1356_p11 = scmp.lt.s32.totalorder %s1354_s10, %s1348_s11 }
  0x53   : > { %p1357_p13 = por %p1356_p11, %p1355_p10 }
  0x55   : > { %p1358_p1 = pnand %p1357_p13, %p1349_p9 }
  0x57   : > { %1361 = shalt.err (!%p1358_p1)
}
  0x58   : > { %s1603_s15 = smov 256   ;;  %s1604_s20 = smov 16  }
  0x59   : > { %336 = dma.hbm_to_vmem [thread:$0]  %s2011_s0, 256, %s331_s14, [#allocation4], %s1603_s15, %s1603_s15, %s1604_s20  }
  0x5a PF: > { %339 = sbr.rel (!%p1706_p4) target bundleno = 117 (0x75), region = 28  ;;  %s340_s21 = sand.u32 (%p1706_p4), 1, %s1599_s8  }
  0x5b   : > { %s341_s22 = scalar_lea.sflag (%p1706_p4), [#allocation8], %s340_s21 }
  0x61   : > { %354 = vsyncadd %s341_s22, 256  ;;  %s1605_s27 = smov [#allocation7]   ;;  %s1362_s16 = scalar_lea.hbm %s1985_s1, 256 }
  0x62   : > { %s360_s30 = sshll.u32 %s1605_s27, 4  ;;  %p1363_p12 = scmp.ne.s32.totalorder %s1985_s1, %s1362_s16  ;;  %s361_s30 = int_to_ptr.vmem [resolvable:$true] %s360_s30 }
  0x63   : > { %p1368_p0 = scmp.lt.u32.totalorder %s1362_s16, %s1362_s16  ;;  %p1370_p3 = scmp.lt.u32.totalorder %s1362_s16, %s1985_s1 }
  0x65   : > { %p1371_p7 = por %p1370_p3, %p1368_p0 }
  0x67   : > { %p1372_p8 = pnand %p1371_p7, %p1363_p12 }
  0x69   : > { %1375 = shalt.err (!%p1372_p8)
}
  0x6a   : > { %s1376_s20 = scalar_lea.vmem %s361_s30, 256  ;;  %s1382_s6 = scalar_lea.vmem %s361_s30, 1024 }
  0x6b   : > { %p1377_p9 = scmp.ne.s32.totalorder %s361_s30, %s1376_s20  ;;  %p1383_p10 = scmp.lt.s32.totalorder %s361_s30, %s361_s30 }
  0x6c   : > { %p1384_p11 = scmp.lt.s32.totalorder %s1382_s6, %s1376_s20 }
  0x6e   : > { %p1385_p13 = por %p1384_p11, %p1383_p10 }
  0x70   : > { %p1386_p1 = pnand %p1385_p13, %p1377_p9 }
  0x72   : > { %1389 = shalt.err (!%p1386_p1)
}
  0x73   : > { %s1606_s23 = smov 256   ;;  %s1607_s21 = smov 16  }
  0x74   : > { %366 = dma.hbm_to_vmem [thread:$0]  %s1985_s1, 256, %s361_s30, %s341_s22, %s1606_s23, %s1606_s23, %s1607_s21  }
  0x75 PF: > { %369 = sbr.rel (!%p1706_p4) target bundleno = 144 (0x90), region = 32  ;;  %s370_s16 = sand.u32 (%p1706_p4), 1, %s1599_s8  }
  0x76   : > { %s371_s27 = scalar_lea.sflag (%p1706_p4), [#allocation8], %s370_s16 }
  0x7c   : > { %384 = vsyncadd %s371_s27, 256  ;;  %s1608_s11 = smov [#allocation9]   ;;  %s1390_s20 = scalar_lea.hbm %s1986_s2, 256 }
  0x7d   : > { %s390_s10 = sshll.u32 %s1608_s11, 4  ;;  %p1391_p12 = scmp.ne.s32.totalorder %s1986_s2, %s1390_s20  ;;  %s391_s10 = int_to_ptr.vmem [resolvable:$true] %s390_s10 }
  0x7e   : > { %p1396_p0 = scmp.lt.u32.totalorder %s1390_s20, %s1390_s20  ;;  %p1398_p3 = scmp.lt.u32.totalorder %s1390_s20, %s1986_s2 }
  0x80   : > { %p1399_p7 = por %p1398_p3, %p1396_p0 }
  0x82   : > { %p1400_p8 = pnand %p1399_p7, %p1391_p12 }
  0x84   : > { %1403 = shalt.err (!%p1400_p8)
}
  0x85   : > { %s1404_s23 = scalar_lea.vmem %s391_s10, 256  ;;  %s1410_s21 = scalar_lea.vmem %s391_s10, 1024 }
  0x86   : > { %p1405_p9 = scmp.ne.s32.totalorder %s391_s10, %s1404_s23  ;;  %p1411_p10 = scmp.lt.s32.totalorder %s391_s10, %s391_s10 }
  0x87   : > { %p1412_p11 = scmp.lt.s32.totalorder %s1410_s21, %s1404_s23 }
  0x89   : > { %p1413_p13 = por %p1412_p11, %p1411_p10 }
  0x8b   : > { %p1414_p1 = pnand %p1413_p13, %p1405_p9 }
  0x8d   : > { %1417 = shalt.err (!%p1414_p1)
}
  0x8e   : > { %s1609_s26 = smov 256   ;;  %s1610_s18 = smov 16  }
  0x8f   : > { %396 = dma.hbm_to_vmem [thread:$0]  %s1986_s2, 256, %s391_s10, %s371_s27, %s1609_s26, %s1609_s26, %s1610_s18  }
  0x90 PF: > { %399 = sbr.rel (!%p1706_p4) target bundleno = 171 (0xab), region = 36  ;;  %s400_s11 = sand.u32 (%p1706_p4), 1, %s1599_s8  }
  0x91   : > { %s401_s14 = scalar_lea.sflag (%p1706_p4), [#allocation11], %s400_s11 }
  0x97   : > { %414 = vsyncadd %s401_s14, 256  ;;  %s1611_s15 = smov [#allocation10]   ;;  %s1418_s22 = scalar_lea.hbm %s1987_s3, 256 }
  0x98   : > { %s420_s20 = sshll.u32 %s1611_s15, 4  ;;  %p1419_p12 = scmp.ne.s32.totalorder %s1987_s3, %s1418_s22  ;;  %s421_s20 = int_to_ptr.vmem [resolvable:$true] %s420_s20 }
  0x99   : > { %p1424_p0 = scmp.lt.u32.totalorder %s1418_s22, %s1418_s22  ;;  %p1426_p3 = scmp.lt.u32.totalorder %s1418_s22, %s1987_s3 }
  0x9b   : > { %p1427_p7 = por %p1426_p3, %p1424_p0 }
  0x9d   : > { %p1428_p8 = pnand %p1427_p7, %p1419_p12 }
  0x9f   : > { %1431 = shalt.err (!%p1428_p8)
}
  0xa0   : > { %s1432_s26 = scalar_lea.vmem %s421_s20, 256  ;;  %s1438_s18 = scalar_lea.vmem %s421_s20, 1024 }
  0xa1   : > { %p1433_p9 = scmp.ne.s32.totalorder %s421_s20, %s1432_s26  ;;  %p1439_p10 = scmp.lt.s32.totalorder %s421_s20, %s421_s20 }
  0xa2   : > { %p1440_p11 = scmp.lt.s32.totalorder %s1438_s18, %s1432_s26 }
  0xa4   : > { %p1441_p13 = por %p1440_p11, %p1439_p10 }
  0xa6   : > { %p1442_p1 = pnand %p1441_p13, %p1433_p9 }
  0xa8   : > { %1445 = shalt.err (!%p1442_p1)
}
  0xa9   : > { %s1612_s0 = smov 256   ;;  %s1613_s16 = smov 16  }
  0xaa   : > { %426 = dma.hbm_to_vmem [thread:$0]  %s1987_s3, 256, %s421_s20, %s401_s14, %s1612_s0, %s1612_s0, %s1613_s16  }
  0xab PF: > { %429 = sbr.rel (!%p1706_p4) target bundleno = 198 (0xc6), region = 40  ;;  %s430_s6 = sand.u32 (%p1706_p4), 1, %s1599_s8  }
  0xac   : > { %s431_s30 = scalar_lea.sflag (%p1706_p4), [#allocation11], %s430_s6 }
  0xb2   : > { %444 = vsyncadd %s431_s30, 256  ;;  %s1614_s22 = smov [#allocation12]   ;;  %s1446_s10 = scalar_lea.hbm %s1988_s4, 256 }
  0xb3   : > { %s450_s23 = sshll.u32 %s1614_s22, 4  ;;  %p1447_p12 = scmp.ne.s32.totalorder %s1988_s4, %s1446_s10  ;;  %s451_s23 = int_to_ptr.vmem [resolvable:$true] %s450_s23 }
  0xb4   : > { %p1452_p0 = scmp.lt.u32.totalorder %s1446_s10, %s1446_s10  ;;  %p1454_p4 = scmp.lt.u32.totalorder %s1446_s10, %s1988_s4 }
  0xb6   : > { %p1455_p3 = por %p1454_p4, %p1452_p0 }
  0xb8   : > { %p1456_p7 = pnand %p1455_p3, %p1447_p12 }
  0xba   : > { %1459 = shalt.err (!%p1456_p7)
}
  0xbb   : > { %s1460_s12 = scalar_lea.vmem %s451_s23, 256  ;;  %s1466_s0 = scalar_lea.vmem %s451_s23, 1024 }
  0xbc   : > { %p1461_p8 = scmp.ne.s32.totalorder %s451_s23, %s1460_s12  ;;  %p1467_p9 = scmp.lt.s32.totalorder %s451_s23, %s451_s23 }
  0xbd   : > { %p1468_p10 = scmp.lt.s32.totalorder %s1466_s0, %s1460_s12 }
  0xbf   : > { %p1469_p11 = por %p1468_p10, %p1467_p9 }
  0xc1   : > { %p1470_p13 = pnand %p1469_p11, %p1461_p8 }
  0xc3   : > { %1473 = shalt.err (!%p1470_p13)
}
  0xc4   : > { %s1615_s16 = smov 256   ;;  %s1616_s11 = smov 16  }
  0xc5   : > { %456 = dma.hbm_to_vmem [thread:$0]  %s1988_s4, 256, %s451_s23, %s431_s30, %s1615_s16, %s1615_s16, %s1616_s11  }
  0xc6 PF: > { %484 = sbr.rel (%p1738_p2) target bundleno = 527 (0x20f), region = 48  ;;  %s486_s22 = sand.u32 (!%p1738_p2), 1, %s1587_s28  }
  0xc7   : > { %s1135_s21 = sshll.u32 (!%p1738_p2), %s486_s22, 5  ;;  %s487_s27 = scalar_lea.sflag (!%p1738_p2), [#allocation4], %s486_s22 }
  0xc8   : > { %s1829_s10 = scalar_lea.vmem (!%p1738_p2), [#allocation3], %s1135_s21  ;;  %p2012_p1 = scmp.ne.s32.totalorder (!%p1738_p2), %s2004_s13, 0 }
  0xcd   : > { %1539 = dma.done.wait (%p2012_p1), %s487_s27, 512  }
  0xce   : > { %1541 = vsyncadd (%p2012_p1), %s487_s27, 4294966784  ;;  %s495_s30 = sand.u32 1, %s1697_s9   ;;  %s1836_s26 = scalar_lea.vmem [#allocation7], %s1135_s21 }
  0xcf   : > { %s496_s23 = scalar_lea.sflag [#allocation8], %s495_s30 }
  0xd0   : > { %1543 = dma.done.wait (%p2012_p1), %s496_s23, 1024  }
  0xd1   : > { %1545 = vsyncadd (%p2012_p1), %s496_s23, 4294966272  ;;  %s1842_s19 = scalar_lea.vmem [#allocation9], %s1135_s21  ;;  %s514_s18 = scalar_lea.sflag [#allocation11], %s495_s30 }
  0xd2   : > { %s1844_s14 = scalar_lea.vmem [#allocation10], %s1135_s21 }
  0xd3   : > { %1547 = dma.done.wait (%p2012_p1), %s514_s18, 1024  }
  0xd4   : > { %1549 = vsyncadd (%p2012_p1), %s514_s18, 4294966272  ;;  %s1850_s20 = scalar_lea.vmem [#allocation12], %s1135_s21 }
  0xd5   : > { %1551 = dma.done.wait (%p69_p5), [#allocation6], 16  }
  0xd6   : > { %1553 = vsyncadd (%p69_p5), [#allocation6], 4294967280 }
  0xd7   : > { %535 = sfence }
  0xd8   : > { %s656_s12 = sld [smem:[#allocation13]]  ;;  %s1145_s0 = sld [smem:[#allocation13 + $0x1]]  ;;  %v674_v9 = vld [vmem:[%s1829_s10] sm:$0xff]  ;;  %v675_v10 = vld [vmem:[%s1829_s10 + $0x8] sm:$0xff]  ;;  %v676_v11 = vld [vmem:[%s1829_s10 + $0x10] sm:$0xff] }
  0xd9   : > { %s1146_s16 = sld [smem:[#allocation13 + $0x2]]  ;;  %v677_v12 = vld [vmem:[%s1829_s10 + $0x18] sm:$0xff]  ;;  %v694_v13 = vsub.f32 1.0, %v674_v9  ;;  %v695_v14 = vsub.f32 1.0, %v675_v10  ;;  %v696_v15 = vsub.f32 1.0, %v676_v11  ;;  %v735_v17 = vld [vmem:[%s1842_s19] sm:$0xff] }
  0xda   : > { %v697_v16 = vsub.f32 1.0, %v677_v12  ;;  %v736_v18 = vld [vmem:[%s1842_s19 + $0x8] sm:$0xff]  ;;  %v737_v19 = vld [vmem:[%s1842_s19 + $0x10] sm:$0xff]  ;;  %v738_v20 = vld [vmem:[%s1842_s19 + $0x18] sm:$0xff]  ;;  %v755_v21 = vsub.f32 1.0, %v735_v17  ;;  %p630_p5 = scmp.lt.s32.totalorder %s1591_s29, 0 }
  0xdb   : > { %v756_v22 = vsub.f32 1.0, %v736_v18  ;;  %v757_v24 = vsub.f32 1.0, %v737_v19  ;;  %v758_v26 = vsub.f32 1.0, %v738_v20  ;;  %v1870_v34 = vld [vmem:[%s1836_s26] sm:$0xff]  ;;  %v1873_v35 = vld [vmem:[%s1836_s26 + $0x8] sm:$0xff]  ;;  %v1876_v37 = vld [vmem:[%s1836_s26 + $0x10] sm:$0xff] }
  0xdc   : > { %s1866_s9 = scalar_select %p630_p5, %s1591_s29, 0  ;;  %v1879_v38 = vld [vmem:[%s1836_s26 + $0x18] sm:$0xff]  ;;  %v1882_v39 = vld [vmem:[%s1844_s14] sm:$0xff]  ;;  %v1885_v41 = vld [vmem:[%s1844_s14 + $0x8] sm:$0xff]  ;;  %v714_v44 = vsub.f32 1.0, %v1870_v34  ;;  %v715_v47 = vsub.f32 1.0, %v1873_v35 }
  0xdd   : > { %v1888_v42 = vld [vmem:[%s1844_s14 + $0x10] sm:$0xff]  ;;  %v1896_v45 = vld [vmem:[%s1844_s14 + $0x18] sm:$0xff]  ;;  %v716_v48 = vsub.f32 1.0, %v1876_v37  ;;  %v717_v49 = vsub.f32 1.0, %v1879_v38  ;;  %v775_v50 = vsub.f32 1.0, %v1882_v39  ;;  %v776_v54 = vsub.f32 1.0, %v1885_v41 }
  0xde   : > { %s657_s11 = ssub.f32 0.0, %s656_s12  ;;  %s1142_s13 = sshll.u32 %s1866_s9, 1  ;;  %v777_v55 = vsub.f32 1.0, %v1888_v42  ;;  %v778_v59 = vsub.f32 1.0, %v1896_v45 }
  0xdf   : > { %s663_s15 = ssub.f32 0.0, %s1145_s0  ;;  %p1890_p2 = scmp.lt.s32.totalorder %s1142_s13, 0 }
  0xe0   : > { %v658_v0 = vstv %s657_s11  ;;  %s669_s6 = ssub.f32 0.0, %s1146_s16  ;;  %s1147_s23 = sshll.u32 %s1591_s29, 3 }
  0xe1   : > { %v659_v1 = vmul.f32 1.442695, %v658_v0  ;;  %v664_v2 = vstv %s663_s15  ;;  %s2027_s13 = smov (!%p1890_p2, %s1142_s13), 0  ;;  %s591_s14 = sand.u32 1, %s1575_s25  }
  0xe2   : > { %v665_v3 = vmul.f32 1.442695, %v664_v2  ;;  %v670_v4 = vstv %s669_s6  ;;  %s1167_s21 = sshll.u32 %s2027_s13, 4  ;;  %s1149_s16 = sshll.u32 %s1591_s29, 7 }
  0xe3   : > { %1281 = vpow2.f32 %v659_v1  ;;  %v671_v5 = vmul.f32 1.442695, %v670_v4  ;;  %s640_s30 = scalar_lea.vmem %s1989_s5, %s1167_s21  ;;  %s1931_s13 = scalar_lea.hbm %s1991_s7, %s1149_s16 }
  0xe4   : > { %1283 = vpow2.f32 %v665_v3  ;;  %s883_s22 = scalar_lea.sflag [#allocation5], %s591_s14  ;;  %p2014_p0 = scmp.ne.s32.totalorder %s2006_s17, 0 }
  0xe5   : > { %1285 = vpow2.f32 %v671_v5  ;;  %s1617_s29 = smov [#allocation14]  }
  0xe6   : > { %1287 = vlog2.f32 %v674_v9  ;;  %s1478_s27 = sshll.u32 %s1617_s29, 4  ;;  %s1479_s27 = int_to_ptr.vmem [resolvable:$false] %s1478_s27 }
  0xe7   : > { %1289 = vlog2.f32 %v675_v10  ;;  %s1480_s10 = scalar_lea.vmem %s1479_s27, 256 }
  0xe8   : > { %1291 = vlog2.f32 %v676_v11 }
  0xe9   : > { %1293 = vlog2.f32 %v677_v12 }
  0xea   : > { %1295 = vlog2.f32 %v694_v13 }
  0xeb   : > { %1297 = vlog2.f32 %v695_v14 }
  0xec   : > { %1299 = vlog2.f32 %v696_v15 }
  0xed   : > { %v1282_v6 = vpop.eup %1281  ;;  %1301 = vlog2.f32 %v697_v16 }
  0xee   : > { %v1284_v7 = vpop.eup %1283  ;;  %1168 = vpush %v1282_v6  ;;  %1303 = vlog2.f32 %v735_v17 }
  0xef   : > { %v1286_v8 = vpop.eup %1285  ;;  %1170 = vpush %v1284_v7  ;;  %1305 = vlog2.f32 %v736_v18 }
  0xf0   : > { %1172 = vpush %v1286_v8  ;;  %v1288_v23 = vpop.eup %1287  ;;  %1307 = vlog2.f32 %v737_v19 }
  0xf1   : > { %v1290_v25 = vpop.eup %1289  ;;  %1309 = vlog2.f32 %v738_v20  ;;  %v683_v52 = vmul.f32 0.6931472, %v1288_v23 }
  0xf2   : > { %v1292_v27 = vpop.eup %1291  ;;  %1311 = vlog2.f32 %v755_v21  ;;  %v685_v53 = vmul.f32 0.6931472, %v1290_v25 }
  0xf3   : > { %v1294_v28 = vpop.eup %1293  ;;  %1313 = vlog2.f32 %v756_v22  ;;  %v687_v57 = vmul.f32 0.6931472, %v1292_v27  ;;  %v690_v9 = vmax.f32 %v683_v52, -100.0  ;;  %v801_v52 = vld [vmem:[%s1850_s20 + $0x8] sm:$0xff] }
  0xf4   : > { %v1296_v29 = vpop.eup %1295  ;;  %1315 = vlog2.f32 %v757_v24  ;;  %v689_v58 = vmul.f32 0.6931472, %v1294_v28  ;;  %v691_v10 = vmax.f32 %v685_v53, -100.0 }
  0xf5   : > { %v1298_v30 = vpop.eup %1297  ;;  %1317 = vlog2.f32 %v758_v26  ;;  %v699_v61 = vmul.f32 0.6931472, %v1296_v29  ;;  %v692_v11 = vmax.f32 %v687_v57, -100.0  ;;  %v710_v25 = vmul.f32 %v690_v9, %v1870_v34  ;;  %v807_v57 = vld [vmem:[%s640_s30 + $0x18] sm:$0xff] }
  0xf6   : > { %v1300_v31 = vpop.eup %1299  ;;  %v701_v62 = vmul.f32 0.6931472, %v1298_v30  ;;  %v693_v12 = vmax.f32 %v689_v58, -100.0  ;;  %v711_v26 = vmul.f32 %v691_v10, %v1873_v35  ;;  %v827_v58 = vlaneseq }
  0xf7   : > { %v1302_v32 = vpop.eup %1301  ;;  %v703_v63 = vmul.f32 0.6931472, %v1300_v31  ;;  %v706_v13 = vmax.f32 %v699_v61, -100.0  ;;  %v712_v27 = vmul.f32 %v692_v11, %v1876_v37 }
  0xf8   : > { %v1304_v33 = vpop.eup %1303  ;;  %v705_v0 = vmul.f32 0.6931472, %v1302_v32  ;;  %v707_v14 = vmax.f32 %v701_v62, -100.0  ;;  %v713_v28 = vmul.f32 %v693_v12, %v1879_v38 }
  0xf9   : > { %v1306_v36 = vpop.eup %1305  ;;  %v744_v1 = vmul.f32 0.6931472, %v1304_v33  ;;  %v708_v15 = vmax.f32 %v703_v63, -100.0  ;;  %v718_v29 = vmul.f32 %v714_v44, %v706_v13  ;;  %v802_v44 = vld [vmem:[%s1850_s20 + $0x10] sm:$0xff] }
  0xfa   : > { %v1308_v40 = vpop.eup %1307  ;;  %v746_v2 = vmul.f32 0.6931472, %v1306_v36  ;;  %v709_v16 = vmax.f32 %v705_v0, -100.0  ;;  %v719_v30 = vmul.f32 %v715_v47, %v707_v14  ;;  %v803_v47 = vld [vmem:[%s1850_s20 + $0x18] sm:$0xff] }
  0xfb   : > { %v1310_v43 = vpop.eup %1309  ;;  %v748_v3 = vmul.f32 0.6931472, %v1308_v40  ;;  %v751_v17 = vmax.f32 %v744_v1, -100.0  ;;  %v720_v31 = vmul.f32 %v716_v48, %v708_v15  ;;  %v722_v48 = vadd.f32 %v718_v29, %v710_v25 }
  0xfc   : > { %v1312_v46 = vpop.eup %1311  ;;  %v750_v4 = vmul.f32 0.6931472, %v1310_v43  ;;  %v752_v18 = vmax.f32 %v746_v2, -100.0  ;;  %v721_v32 = vmul.f32 %v717_v49, %v709_v16  ;;  %v723_v49 = vadd.f32 %v719_v30, %v711_v26 }
  0xfd   : > { %v1314_v51 = vpop.eup %1313  ;;  %v760_v5 = vmul.f32 0.6931472, %v1312_v46  ;;  %v753_v19 = vmax.f32 %v748_v3, -100.0  ;;  %v771_v33 = vmul.f32 %v751_v17, %v1882_v39  ;;  %v800_v46 = vld [vmem:[%s1850_s20] sm:$0xff]  ;;  %v724_v53 = vadd.f32 %v720_v31, %v712_v27  ;;  %s1141_s20 = sshll.u32 %s591_s14, 3 }
  0xfe   : > { %v1316_v56 = vpop.eup %1315  ;;  %v762_v6 = vmul.f32 0.6931472, %v1314_v51  ;;  %v754_v20 = vmax.f32 %v750_v4, -100.0  ;;  %v772_v34 = vmul.f32 %v752_v18, %v1885_v41  ;;  %v804_v51 = vld [vmem:[%s640_s30] sm:$0xff]  ;;  %v725_v39 = vadd.f32 %v721_v32, %v713_v28  ;;  %v806_v41 = vld [vmem:[%s640_s30 + $0x10] sm:$0xff]  ;;  %s593_s12 = scalar_lea.vmem [#allocation14], %s1141_s20 }
  0xff   : > { %v1318_v60 = vpop.eup %1317  ;;  %v764_v7 = vmul.f32 0.6931472, %v1316_v56  ;;  %v767_v21 = vmax.f32 %v760_v5, -100.0  ;;  %v773_v35 = vmul.f32 %v753_v19, %v1888_v42  ;;  %v805_v56 = vld [vmem:[%s640_s30 + $0x8] sm:$0xff]  ;;  %v808_v42 = vsub.f32 %v800_v46, %v804_v51  ;;  %s896_s0 = sshll.u32 %s593_s12, 4  ;;  %s1933_s0 = int_to_ptr.vmem [resolvable:$true] %s896_s0 }
 0x100   : > { %v766_v8 = vmul.f32 0.6931472, %v1318_v60  ;;  %v768_v22 = vmax.f32 %v762_v6, -100.0  ;;  %v774_v36 = vmul.f32 %v754_v20, %v1896_v45  ;;  %v810_v60 = vsub.f32 %v802_v44, %v806_v41  ;;  %s1474_s21 = scalar_lea.vmem %s1933_s0, 128  ;;  %p1481_p7 = scmp.lt.s32.totalorder %s1933_s0, %s1479_s27 }
 0x101   : > { %v769_v23 = vmax.f32 %v764_v7, -100.0  ;;  %v779_v37 = vmul.f32 %v775_v50, %v767_v21  ;;  %v811_v61 = vsub.f32 %v803_v47, %v807_v57  ;;  %v726_v62 = vsub.f32 0.0, %v722_v48  ;;  %p1475_p12 = scmp.ne.s32.totalorder %s1933_s0, %s1474_s21  ;;  %p1482_p8 = scmp.lt.s32.totalorder %s1480_s10, %s1474_s21 }
 0x102   : > { %v770_v24 = vmax.f32 %v766_v8, -100.0  ;;  %v780_v38 = vmul.f32 %v776_v54, %v768_v22  ;;  %v727_v63 = vsub.f32 0.0, %v723_v49  ;;  %v728_v0 = vsub.f32 0.0, %v724_v53 }
 0x103   : > { %v781_v40 = vmul.f32 %v777_v55, %v769_v23  ;;  %v783_v45 = vadd.f32 %v779_v37, %v771_v33  ;;  %v729_v1 = vsub.f32 0.0, %v725_v39  ;;  %v812_v2 = vand.u32 2147483647, %v808_v42  ;;  %p1476_p4 = pnand %p1475_p12, %p2014_p0  ;;  %p1483_p9 = por %p1482_p8, %p1481_p7 }
 0x104   : > { %v782_v43 = vmul.f32 %v778_v59, %v770_v24  ;;  %v784_v50 = vadd.f32 %v780_v38, %v772_v34  ;;  %v809_v59 = vsub.f32 %v801_v52, %v805_v56  ;;  %v828_v3 = vshrl.u32 %v827_v58, 7 }
 0x105   : > { %v785_v54 = vadd.f32 %v781_v40, %v773_v35  ;;  %v829_v4 = vstv %s1147_s23  ;;  %v787_v5 = vsub.f32 0.0, %v783_v45  ;;  %v814_v11 = vand.u32 2147483647, %v810_v60  ;;  %p1477_p3 = pneg %p1476_p4 }
 0x106   : > { %v786_v55 = vadd.f32 %v782_v43, %v774_v36  ;;  %v788_v6 = vsub.f32 0.0, %v784_v50  ;;  %v813_v10 = vand.u32 2147483647, %v809_v59  ;;  %v815_v12 = vand.u32 2147483647, %v811_v61 }
 0x107   : > { %v789_v7 = vsub.f32 0.0, %v785_v54  ;;  %v830_v19 = vadd.s32 %v829_v4, %v828_v3  ;;  %p1484_p10 = pnand %p1483_p9, %p1477_p3 }
 0x108   : > { %v790_v8 = vsub.f32 0.0, %v786_v55 }
 0x109   : > { %vm835_vm0 = vcmp.lt.s32.totalorder %v830_v19, 4 }
 0x11f   : > { %s1169_s26 = spop %1168 }
 0x120   : > { %v730_v9 = vstv %s1169_s26  ;;  %s1171_s19 = spop %1170 }
 0x121   : > { %v731_v13 = vmul.f32 %v730_v9, %v726_v62  ;;  %v732_v14 = vmul.f32 %v730_v9, %v727_v63  ;;  %v733_v15 = vmul.f32 %v730_v9, %v728_v0  ;;  %v734_v16 = vmul.f32 %v730_v9, %v729_v1  ;;  %s1173_s18 = spop %1172 }
 0x122   : > { %v791_v17 = vstv %s1171_s19  ;;  %v816_v18 = vstv %s1173_s18 }
 0x123   : > { %v792_v20 = vmul.f32 %v791_v17, %v787_v5  ;;  %v793_v21 = vmul.f32 %v791_v17, %v788_v6  ;;  %v794_v22 = vmul.f32 %v791_v17, %v789_v7  ;;  %v795_v23 = vmul.f32 %v791_v17, %v790_v8 }
 0x124   : > { %v817_v24 = vmul.f32 %v816_v18, %v812_v2  ;;  %v818_v25 = vmul.f32 %v816_v18, %v813_v10  ;;  %v819_v26 = vmul.f32 %v816_v18, %v814_v11  ;;  %v820_v27 = vmul.f32 %v816_v18, %v815_v12 }
 0x125   : > { %v796_v28 = vadd.f32 %v792_v20, %v731_v13  ;;  %v797_v29 = vadd.f32 %v793_v21, %v732_v14  ;;  %v798_v30 = vadd.f32 %v794_v22, %v733_v15  ;;  %v799_v31 = vadd.f32 %v795_v23, %v734_v16 }
 0x127   : > { %v821_v32 = vadd.f32 %v817_v24, %v796_v28  ;;  %v823_v33 = vadd.f32 %v819_v26, %v798_v30  ;;  %v822_v34 = vadd.f32 %v818_v25, %v797_v29  ;;  %v824_v35 = vadd.f32 %v820_v27, %v799_v31 }
 0x129   : > { %v840_v36 = vcombine.low %v821_v32, %v823_v33  ;;  %v841_v37 = vcombine.high %v821_v32, %v823_v33  ;;  %v842_v38 = vcombine.low %v822_v34, %v824_v35  ;;  %v843_v40 = vcombine.high %v822_v34, %v824_v35 }
 0x12b   : > { %v848_v43 = vsel %vm835_vm0, %v840_v36, 0.0  ;;  %v849_v46 = vsel %vm835_vm0, %v841_v37, 0.0  ;;  %v850_v52 = vsel %vm835_vm0, %v842_v38, 0.0  ;;  %v851_v47 = vsel %vm835_vm0, %v843_v40, 0.0 }
 0x12c   : > { %v867_v51 = vadd.f32 %v849_v46, %v848_v43 }
 0x12e   : > { %v868_v44 = vadd.f32 %v867_v51, %v850_v52 }
 0x130   : > { %v869_v48 = vadd.f32 %v868_v44, %v851_v47 }
 0x132   : > { %870 = vadd.xlane.f32.xlu0 %v869_v48 }
 0x1bf   : > { %v871_v49 = vpop.xlane.xlu0 %870 }
 0x1c0   : > { %v872_v53 = vrot.slane %v871_v49, 4 }
 0x1c2   : > { %v873_v39 = vadd.f32 %v872_v53, %v871_v49 }
 0x1c4   : > { %v874_v56 = vrot.slane %v873_v39, 2 }
 0x1c6   : > { %v875_v41 = vadd.f32 %v874_v56, %v873_v39 }
 0x1c8   : > { %v876_v57 = vrot.slane %v875_v41, 1 }
 0x1ca   : > { %v877_v42 = vadd.f32 %v876_v57, %v875_v41 }
 0x1cc   : > { %1174 = vpush %v877_v42 }
 0x1fd   : > { %s1175_s11 = spop %1174 }
 0x1fe   : > { %s879_s15 = smul.f32 0.00048828125, %s1175_s11 }
 0x200   : > { %v880_v58 = vstv %s879_s15 }
 0x201   : > { %881 = vst [vmem:[%s593_s12] sm:$0xff] %v880_v58 }
 0x202   : > { %1487 = shalt.err (!%p1484_p10)
}
 0x203   : > { %s1488_s30 = scalar_lea.hbm %s1931_s13, 128  ;;  %s1492_s19 = scalar_lea.hbm %s1991_s7, 256 }
 0x204   : > { %p1489_p11 = scmp.ne.s32.totalorder %s1931_s13, %s1488_s30  ;;  %p1493_p5 = scmp.lt.u32.totalorder %s1931_s13, %s1991_s7 }
 0x205   : > { %p1494_p2 = scmp.lt.u32.totalorder %s1492_s19, %s1488_s30  ;;  %p1496_p4 = scmp.lt.u32.totalorder %s1488_s30, %s1931_s13 }
 0x206   : > { %p1490_p13 = pnand %p1489_p11, %p2014_p0 }
 0x207   : > { %p1495_p12 = por %p1494_p2, %p1493_p5 }
 0x208   : > { %p1491_p1 = pneg %p1490_p13 }
 0x209   : > { %p1497_p3 = por %p1496_p4, %p1495_p12 }
 0x20b   : > { %p1498_p7 = pnand %p1497_p3, %p1491_p1 }
 0x20d   : > { %1501 = shalt.err (!%p1498_p7)
}
 0x20e   : > { %1185 = dma.vmem_to_hbm [thread:$0]  (%p2014_p0), %s1933_s0, 128, %s1931_s13, %s883_s22  }
 0x20f PF: > { %s2015_s20 = sld [smem:[#allocation24_spill]]  ;;  %s908_s12 = sand.u32 1, %s1571_s24  }
 0x210   : > { %s909_s16 = scalar_lea.sflag [#allocation5], %s908_s12 }
 0x215   : > { %p2016_p8 = scmp.ne.s32.totalorder %s2015_s20, 0 }
 0x217   : > { %p1192_p9 = pnand %p1088_p6, %p2016_p8 }
 0x219   : > { %1555 = dma.done.wait (!%p1192_p9), %s909_s16, 128  }
 0x21a   : > { %1557 = vsyncadd (!%p1192_p9), %s909_s16, 4294967168  ;;  %s30_s8 = sadd.s32 1, %s1599_s8   ;;  %s2017_s11 = sld [smem:[#allocation20_spill]] }
 0x21b   : > { %p27_p10 = scmp.ge.s32.totalorder %s30_s8, 4   ;;  %s2018_s26 = sld [smem:[#allocation23_spill]] }
 0x21c   : > { %s2019_s29 = sld [smem:[#allocation21_spill]]  ;;  %s2020_s30 = sld [smem:[#allocation22_spill]] }
 0x21d   : > { %s2021_s24 = smov %s1575_s25  ;;  %s2023_s27 = smov %s1587_s28 }
 0x21e   : > { %s1974_s28 = smov 0   ;;  %29 = sbr.rel (!%p27_p10) target bundleno = 15 (0xf), region = 157 }
 0x220   : > { %s2022_s25 = smov %s2017_s11 }
 0x225   :  { %914 = vsyncpa [#allocation4], 1 }
 0x226   :  { %916 = vsyncpa [#allocation4 + $0x1], 1 }
 0x227   :  { %917 = vsyncpa [#allocation8], 1 }
 0x228   :  { %919 = vsyncpa [#allocation8 + $0x1], 1 }
 0x229   :  { %920 = vsyncpa [#allocation11], 1 }
 0x22a   :  { %922 = vsyncpa [#allocation11 + $0x1], 1 }
 0x22b   :  { %923 = vsyncpa [#allocation5], 1 }
 0x22c   :  { %925 = vsyncpa [#allocation5 + $0x1], 1 }
 0x22d   :  { %926 = vsyncpa [#allocation6], 1 }
 0x22e   :  { %928 = vsyncpa [#allocation6 + $0x1], 1 }

</bundles_post_ra>
